<compile_context>
chip_gen: v7x
topology: tpu7x:2x2x1
jax: 0.10.0
libtpu: 0.0.40
codegen_flags: <defaults>
</compile_context>

<pallas_src>
import functools

import jax
import jax.numpy as jnp
from jax.experimental import pallas as pl
from jax.experimental.pallas import tpu as pltpu


# ---------------------------------------------------------------------------
# Pallas kernel: fused  out = [relu](x @ w + b)
# ---------------------------------------------------------------------------
def _linear_kernel(x_ref, w_ref, b_ref, o_ref, *, apply_relu):
    acc = jnp.dot(x_ref[...], w_ref[...], preferred_element_type=jnp.float32)
    acc = acc + b_ref[...]
    if apply_relu:
        acc = jnp.maximum(acc, 0.0)
    o_ref[...] = acc.astype(o_ref.dtype)


def pallas_linear(x, w, b, *, relu=False):
    """out[M, N] = (relu)(x[M, K] @ w[K, N] + b[N]) as a single pallas_call."""
    M, K = x.shape
    Kw, N = w.shape
    assert K == Kw and b.shape == (N,)

    # Largest M tile that divides M (multiple of 8, unless we take the full
    # axis).  Tiny demo shapes collapse to a single block; realistic shapes
    # get a pipelined, core-shardable grid.
    tm = M
    for cand in (256, 128, 64, 32, 16, 8):
        if cand <= M and M % cand == 0:
            tm = cand
            break
    grid = (M // tm,)

    cost = pl.CostEstimate(
        flops=2 * M * K * N,
        transcendentals=0,
        bytes_accessed=4 * (M * K + K * N + N + M * N),
    )

    return pl.pallas_call(
        functools.partial(_linear_kernel, apply_relu=relu),
        out_shape=jax.ShapeDtypeStruct((M, N), x.dtype),
        grid=grid,
        in_specs=[
            pl.BlockSpec((tm, K), lambda i: (i, 0)),   # activations stream
            pl.BlockSpec((K, N), lambda i: (0, 0)),    # weights resident
            pl.BlockSpec((1, N), lambda i: (0, 0)),    # bias resident
        ],
        out_specs=pl.BlockSpec((tm, N), lambda i: (i, 0)),
        compiler_params=pltpu.CompilerParams(
            dimension_semantics=("parallel",)),
        cost_estimate=cost,
    )(x, w, b.reshape(1, N))


# ---------------------------------------------------------------------------
# Layout plumbing (JAX wrapper): im2col, phase-packed weights, pixel shuffle
# ---------------------------------------------------------------------------
def _im2col_3x3(x):
    """[B, Ci, H, W] -> [B*H*W, Ci*9] 3x3 patches of the zero-padded input.

    K-axis order is (ci, r*3 + c) over window offsets (r, c).
    """
    B, Ci, H, W = x.shape
    xp = jnp.pad(x, ((0, 0), (0, 0), (1, 1), (1, 1)))
    cols = jnp.stack(
        [xp[:, :, r:r + H, c:c + W] for r in range(3) for c in range(3)],
        axis=2)                                     # [B, Ci, 9, H, W]
    cols = jnp.transpose(cols, (0, 3, 4, 1, 2))     # [B, H, W, Ci, 9]
    return cols.reshape(B * H * W, Ci * 9)


def _phase_pack_convtranspose_weight(wt):
    """Pack ConvTranspose2d(k=4, s=2, p=1) weight [Ci, Co, 4, 4] into the
    [Ci*9, Co*4] matrix of its equivalent 3x3-conv + pixel-shuffle form.

    Row order matches _im2col_3x3 (ci, r*3+c); column order is (co, dy, dx).
    """
    ci, co = wt.shape[0], wt.shape[1]
    w3 = jnp.zeros((ci, 3, 3, co, 2, 2), wt.dtype)
    for dy in range(2):
        for dx in range(2):
            for r in range(dy, dy + 2):
                for c in range(dx, dx + 2):
                    kh = 3 + dy - 2 * r
                    kw = 3 + dx - 2 * c
                    w3 = w3.at[:, r, c, :, dy, dx].set(wt[:, :, kh, kw])
    return w3.reshape(ci * 9, co * 4)


def _pixel_shuffle(y, B, H, W, co):
    """[B*H*W, co*4] (column order (co, dy, dx)) -> [B, co, 2H, 2W]."""
    y = y.reshape(B, H, W, co, 2, 2)
    y = jnp.transpose(y, (0, 3, 1, 4, 2, 5))        # [B, co, H, dy, W, dx]
    return y.reshape(B, co, 2 * H, 2 * W)


# ---------------------------------------------------------------------------
# FixedVarianceDecoderSmall forward
# ---------------------------------------------------------------------------
def decoder_forward(z, params, hidden_channels, output_shape):
    C_out, H, W = output_shape
    hc = hidden_channels
    H4, W4 = H // 4, W // 4
    H2, W2 = H // 2, W // 2
    B = z.shape[0]

    # --- fc ----------------------------------------------------------------
    x = pallas_linear(z, params["fc_w"].T, params["fc_b"])        # [B, 2hc*H4*W4]
    x = x.reshape(B, 2 * hc, H4, W4)                              # PyTorch .view

    # --- conv2 (ConvTranspose2d 2hc->hc) + ReLU as one fused matmul ---------
    p2 = _im2col_3x3(x)                                           # [B*H4*W4, 2hc*9]
    w2 = _phase_pack_convtranspose_weight(params["conv2_w"])      # [2hc*9, hc*4]
    b2 = jnp.repeat(params["conv2_b"], 4)
    y2 = pallas_linear(p2, w2, b2, relu=True)                     # [B*H4*W4, hc*4]
    x = _pixel_shuffle(y2, B, H4, W4, hc)                         # [B, hc, H2, W2]

    # --- conv1 (ConvTranspose2d hc->C_out) ----------------------------------
    p1 = _im2col_3x3(x)                                           # [B*H2*W2, hc*9]
    w1 = _phase_pack_convtranspose_weight(params["conv1_w"])      # [hc*9, C_out*4]
    b1 = jnp.repeat(params["conv1_b"], 4)
    y1 = pallas_linear(p1, w1, b1)                                # [B*H2*W2, C_out*4]
    x_mu = _pixel_shuffle(y1, B, H2, W2, C_out)                   # [B, C_out, H, W]

    # TODO(synk): x_sigma is a constant all-ones tensor (fixed variance); no
    # kernel compute is warranted.
    x_sigma = jnp.ones_like(x_mu)
    return x_mu, x_sigma


# ---------------------------------------------------------------------------
# Pure-JAX reference (independent path via lax dilated conv)
# ---------------------------------------------------------------------------
def _conv_transpose2d_ref(x, wt, b):
    """PyTorch ConvTranspose2d(k=4, s=2, p=1) via lhs-dilated convolution."""
    k = jnp.transpose(wt, (1, 0, 2, 3))[:, :, ::-1, ::-1]         # [Co, Ci, 4, 4]
    y = jax.lax.conv_general_dilated(
        x, k, window_strides=(1, 1), padding=((2, 2), (2, 2)),
        lhs_dilation=(2, 2), rhs_dilation=(1, 1),
        dimension_numbers=("NCHW", "OIHW", "NCHW"))
    return y + b[None, :, None, None]


def reference_forward(z, params, hidden_channels, output_shape):
    C_out, H, W = output_shape
    hc = hidden_channels
    B = z.shape[0]
    x = z @ params["fc_w"].T + params["fc_b"]
    x = x.reshape(B, 2 * hc, H // 4, W // 4)
    x = jax.nn.relu(_conv_transpose2d_ref(x, params["conv2_w"], params["conv2_b"]))
    x_mu = _conv_transpose2d_ref(x, params["conv1_w"], params["conv1_b"])
    return x_mu, jnp.ones_like(x_mu)


if __name__ == "__main__":
    B = 2
    hidden_channels = 32
    latent_dims = 32
    output_shape = [4, 16, 16]                    # [C, H, W]
    C_out, H, W = output_shape
    hc = hidden_channels
    d_fc = hc * 2 * (H // 4) * (W // 4)

    key = jax.random.PRNGKey(0)
    ks = jax.random.split(key, 7)
    params = {
        "fc_w": jax.random.normal(ks[0], (d_fc, latent_dims), jnp.float32)
                * (latent_dims ** -0.5),
        "fc_b": jax.random.normal(ks[1], (d_fc,), jnp.float32) * 0.01,
        "conv2_w": jax.random.normal(ks[2], (2 * hc, hc, 4, 4), jnp.float32)
                   * ((2 * hc * 16) ** -0.5),
        "conv2_b": jax.random.normal(ks[3], (hc,), jnp.float32) * 0.01,
        "conv1_w": jax.random.normal(ks[4], (hc, C_out, 4, 4), jnp.float32)
                   * ((hc * 16) ** -0.5),
        "conv1_b": jax.random.normal(ks[5], (C_out,), jnp.float32) * 0.01,
    }
    z = jax.random.normal(ks[6], (B, latent_dims), jnp.float32)

    x_mu, x_sigma = decoder_forward(z, params, hidden_channels, output_shape)
    jax.block_until_ready((x_mu, x_sigma))

    mu_ref, sigma_ref = reference_forward(z, params, hidden_channels, output_shape)
    assert x_mu.shape == (B, C_out, H, W)
    assert x_sigma.shape == (B, C_out, H, W)
    assert jnp.allclose(x_mu, mu_ref, atol=2e-3, rtol=2e-3)
    assert jnp.allclose(x_sigma, sigma_ref)
    assert bool(jnp.all(x_sigma == 1.0))

    print("KERNEL_OK")
</pallas_src>

<mosaic_0001>
module attributes {stable_mosaic.version = 11 : i64} {
  func.func @_linear_kernel(%arg0: i32, %arg1: memref<2x32xf32, #tpu.memory_space<vmem>>, %arg2: memref<32x1024xf32, #tpu.memory_space<vmem>>, %arg3: memref<1x1024xf32, #tpu.memory_space<vmem>>, %arg4: memref<2x1024xf32, #tpu.memory_space<vmem>>) attributes {dimension_semantics = [#tpu.dimension_semantics<parallel>], iteration_bounds = array<i64: 1>, scalar_prefetch = 0 : i64, scratch_operands = 0 : i64, tpu.core_type = #tpu.core_type<tc>, window_params = [{transform_indices = @transform_0, window_bounds = array<i64: 2, 32>}, {pipeline_mode = #tpu.pipeline_mode<synchronous>, transform_indices = @transform_1, window_bounds = array<i64: 32, 1024>}, {pipeline_mode = #tpu.pipeline_mode<synchronous>, transform_indices = @transform_2, window_bounds = array<i64: 1, 1024>}, {transform_indices = @transform_3, window_bounds = array<i64: 2, 1024>}]} {
    %c0 = arith.constant 0 : index
    %c0_0 = arith.constant 0 : index
    %0 = vector.load %arg1[%c0, %c0_0] : memref<2x32xf32, #tpu.memory_space<vmem>>, vector<2x32xf32>
    %c0_1 = arith.constant 0 : index
    %c0_2 = arith.constant 0 : index
    %1 = vector.load %arg2[%c0_1, %c0_2] : memref<32x1024xf32, #tpu.memory_space<vmem>>, vector<32x1024xf32>
    %cst = arith.constant dense<0.000000e+00> : vector<2x1024xf32>
    %2 = tpu.matmul %0, %1, %cst {dimension_numbers = #tpu.dot_dimension_numbers<[1], [0], [0], [1], [0, 0, 1, 1], [], []>} : vector<2x32xf32>, vector<32x1024xf32>, vector<2x1024xf32> -> vector<2x1024xf32>
    %c0_3 = arith.constant 0 : index
    %c0_4 = arith.constant 0 : index
    %3 = vector.load %arg3[%c0_3, %c0_4] : memref<1x1024xf32, #tpu.memory_space<vmem>>, vector<1x1024xf32>
    %4 = vector.broadcast %3 : vector<1x1024xf32> to vector<2x1024xf32>
    %5 = arith.addf %2, %4 : vector<2x1024xf32>
    %c0_5 = arith.constant 0 : index
    %c0_6 = arith.constant 0 : index
    %6 = vector.load %arg4[%c0_5, %c0_6] : memref<2x1024xf32, #tpu.memory_space<vmem>>, vector<2x1024xf32>
    tpu.vector_store %arg4[%c0_5, %c0_6], %5 {strides = array<i32>} : memref<2x1024xf32, #tpu.memory_space<vmem>>, vector<2x1024xf32>,
    return
  }
  func.func @transform_0(%arg0: i32) -> (i32, i32) {
    %c0_i32 = arith.constant 0 : i32
    %c0_i32_0 = arith.constant 0 : i32
    return %arg0, %c0_i32 : i32, i32
  }
  func.func @transform_1(%arg0: i32) -> (i32, i32) {
    %c0_i32 = arith.constant 0 : i32
    %c0_i32_0 = arith.constant 0 : i32
    %c0_i32_1 = arith.constant 0 : i32
    return %c0_i32, %c0_i32_0 : i32, i32
  }
  func.func @transform_2(%arg0: i32) -> (i32, i32) {
    %c0_i32 = arith.constant 0 : i32
    %c0_i32_0 = arith.constant 0 : i32
    %c0_i32_1 = arith.constant 0 : i32
    return %c0_i32, %c0_i32_0 : i32, i32
  }
  func.func @transform_3(%arg0: i32) -> (i32, i32) {
    %c0_i32 = arith.constant 0 : i32
    %c0_i32_0 = arith.constant 0 : i32
    return %arg0, %c0_i32 : i32, i32
  }
}

</mosaic_0001>

<bundles_post_ra>
// kernel: tpu_custom_call.1
= control target key start
LH: loop header
LB: loop body
LE: loop exit
PB: predicated region body
PF: predicated region fallthrough
CT: control target
= control target key end

     0   :  { %8 = vsyncpa [#allocation3], 0  ;;  %s699_s0 = inlined_call_operand.hbm [shape: f32[2,32], index: 0, kind: input, shape index: {}]   ;;  %s700_s1 = inlined_call_operand.hbm [shape: f32[32,1024], index: 1, kind: input, shape index: {}]   ;;  %s701_s2 = inlined_call_operand.hbm [shape: f32[1,1024], index: 2, kind: input, shape index: {}]   ;;  %s702_s3 = inlined_call_operand.hbm [shape: f32[2,1024], index: 3, kind: output, shape index: {}]  }
   0x1   :  { %9 = vsyncpa [#allocation6], 0 }
   0x2   :  { %10 = vsyncpa [#allocation4], 0  ;;  %s615_s12 = smov [#allocation5]   ;;  %s521_s16 = scalar_lea.hbm %s700_s1, 4096 }
   0x3   :  { %s26_s13 = sshll.u32 %s615_s12, 4  ;;  %p522_p0 = scmp.ne.s32.totalorder %s700_s1, %s521_s16  ;;  %s27_s13 = int_to_ptr.vmem [resolvable:$true] %s26_s13 }
   0x4   :  { %p525_p1 = scmp.lt.u32.totalorder %s521_s16, %s700_s1 }
   0x6   :  { %p527_p2 = pnand %p525_p1, %p522_p0 }
   0x8   :  { %530 = shalt.err (!%p527_p2)
}
   0x9   :  { %s531_s21 = scalar_lea.vmem %s27_s13, 4096  ;;  %p536_p4 = scmp.lt.s32.totalorder %s27_s13, %s27_s13 }
   0xa   :  { %p532_p3 = scmp.ne.s32.totalorder %s27_s13, %s531_s21  ;;  %p537_p5 = scmp.lt.s32.totalorder %s531_s21, %s531_s21 }
   0xc   :  { %p538_p6 = por %p537_p5, %p536_p4 }
   0xe   :  { %p539_p7 = pnand %p538_p6, %p532_p3 }
  0x10   :  { %542 = shalt.err (!%p539_p7)
}
  0x11   :  { %s616_s22 = smov 1024   ;;  %s617_s23 = smov 64  }
  0x12   :  { %32 = dma.hbm_to_vmem [thread:$0]  %s700_s1, 4096, %s27_s13, [#allocation6], %s616_s22, %s616_s22, %s617_s23  }
  0x13   :  { %s618_s26 = smov [#allocation2]   ;;  %s619_s28 = smov [#allocation7]  }
  0x14   :  { %s17_s27 = sshll.u32 %s618_s26, 4  ;;  %s39_s29 = sshll.u32 %s619_s28, 4  ;;  %s18_s27 = int_to_ptr.vmem [resolvable:$true] %s17_s27  ;;  %s40_s29 = int_to_ptr.vmem [resolvable:$true] %s39_s29 }
  0x15   :  { %s543_s5 = scalar_lea.hbm %s699_s0, 32 }
  0x16   :  { %p544_p8 = scmp.ne.s32.totalorder %s699_s0, %s543_s5  ;;  %p547_p9 = scmp.lt.u32.totalorder %s543_s5, %s699_s0 }
  0x18   :  { %p549_p10 = pnand %p547_p9, %p544_p8 }
  0x1a   :  { %552 = shalt.err (!%p549_p10)
}
  0x1b   :  { %s553_s1 = scalar_lea.vmem %s18_s27, 32  ;;  %p558_p12 = scmp.lt.s32.totalorder %s18_s27, %s18_s27 }
  0x1c   :  { %p554_p11 = scmp.ne.s32.totalorder %s18_s27, %s553_s1  ;;  %p559_p13 = scmp.lt.s32.totalorder %s553_s1, %s553_s1 }
  0x1e   :  { %p560_p0 = por %p559_p13, %p558_p12 }
  0x20   :  { %p561_p1 = pnand %p560_p0, %p554_p11 }
  0x22   :  { %564 = shalt.err (!%p561_p1)
}
  0x23   :  { %20 = dma.hbm_to_vmem [thread:$0]  %s699_s0, 32, %s18_s27, [#allocation3]  }
  0x24   :  { %s565_s14 = scalar_lea.hbm %s701_s2, 128 }
  0x25   :  { %p566_p2 = scmp.ne.s32.totalorder %s701_s2, %s565_s14  ;;  %p569_p3 = scmp.lt.u32.totalorder %s565_s14, %s701_s2 }
  0x27   :  { %p571_p4 = pnand %p569_p3, %p566_p2 }
  0x29   :  { %574 = shalt.err (!%p571_p4)
}
  0x2a   :  { %s575_s19 = scalar_lea.vmem %s40_s29, 128  ;;  %p580_p6 = scmp.lt.s32.totalorder %s40_s29, %s40_s29 }
  0x2b   :  { %p576_p5 = scmp.ne.s32.totalorder %s40_s29, %s575_s19  ;;  %p581_p7 = scmp.lt.s32.totalorder %s575_s19, %s575_s19 }
  0x2d   :  { %p582_p8 = por %p581_p7, %p580_p6 }
  0x2f   :  { %p583_p9 = pnand %p582_p8, %p576_p5 }
  0x31   :  { %586 = shalt.err (!%p583_p9)
}
  0x32   :  { %42 = dma.hbm_to_vmem [thread:$0]  %s701_s2, 128, %s40_s29, [#allocation6]  }
  0x33   :  { %609 = dma.done.wait [#allocation3], 32  }
  0x34   :  { %610 = vsyncadd [#allocation3], 4294967264 }
  0x35   :  { %611 = dma.done.wait [#allocation6], 4224  }
  0x36   :  { %612 = vsyncadd [#allocation6], 4294963072  ;;  %v620_v0 = vmov 0.0   ;;  %v54_v1 = vld [vmem:[#allocation5 + $0x8] sm:$0xff]  ;;  %v56_v3 = vld [vmem:[#allocation5 + $0x18] sm:$0xff]  ;;  %vm127_vm0 = vcmask 261120   ;;  %v87_v50 = vlaneseq }
  0x37   :  { %195 = vmatprep.mubr.f32.mxu0 %v620_v0  ;;  %266 = vmatprep.mubr.f32.mxu1 %v620_v0  ;;  %v62_v2 = vld [vmem:[#allocation5 + $0x48] sm:$0xff]  ;;  %v64_v5 = vld [vmem:[#allocation5 + $0x58] sm:$0xff]  ;;  %v53_v6 = vld [vmem:[#allocation5] sm:$0xff]  ;;  %v621_v53 = vmov 1983009808   ;;  %s622_s2 = smov [#allocation8]  }
  0x38   :  { %v481_v4 = vpack.c.bf16 %v62_v2, %v54_v1  ;;  %v61_v7 = vld [vmem:[#allocation5 + $0x40] sm:$0xff]  ;;  %v489_v8 = vpack.c.bf16 %v64_v5, %v56_v3  ;;  %v55_v10 = vld [vmem:[#allocation5 + $0x10] sm:$0xff]  ;;  %v70_v12 = vld [vmem:[#allocation5 + $0x88] sm:$0xff]  ;;  %v88_v51 = vshrl.u32 %v87_v50, 7  ;;  %v426_v54 = vunpack.c.l.s4 %v621_v53  ;;  %s467_s21 = sshll.u32 %s622_s2, 4  ;;  %s468_s21 = int_to_ptr.vmem [resolvable:$true] %s467_s21 }
  0x39   :  { %v483_v9 = vpack.c.bf16 %v61_v7, %v53_v6  ;;  %v63_v11 = vld [vmem:[#allocation5 + $0x50] sm:$0xff]  ;;  %v78_v14 = vld [vmem:[#allocation5 + $0xc8] sm:$0xff]  ;;  %v72_v15 = vld [vmem:[#allocation5 + $0x98] sm:$0xff]  ;;  %s587_s22 = scalar_lea.vmem %s468_s21, 256  ;;  %p592_p11 = scmp.lt.s32.totalorder %s468_s21, %s468_s21 }
  0x3a   :  { %482 = vmatprep.subr.bf16.mxu0 %v481_v4  ;;  %v491_v13 = vpack.c.bf16 %v63_v11, %v55_v10  ;;  %v80_v16 = vld [vmem:[#allocation5 + $0xd8] sm:$0xff]  ;;  %490 = vmatprep.subr.bf16.mxu1 %v489_v8  ;;  %v485_v17 = vpack.c.bf16 %v78_v14, %v70_v12  ;;  %v69_v19 = vld [vmem:[#allocation5 + $0x80] sm:$0xff]  ;;  %v71_v21 = vld [vmem:[#allocation5 + $0x90] sm:$0xff]  ;;  %v89_v52 = vsub.s32 0, %v88_v51  ;;  %v97_v56 = vsub.s32 2, %v88_v51  ;;  %p588_p10 = scmp.ne.s32.totalorder %s468_s21, %s587_s22  ;;  %p593_p12 = scmp.lt.s32.totalorder %s587_s22, %s587_s22 }
  0x3b   :  { %484 = vmatpush1.bf16.msra.mxu0 %v483_v9  ;;  %v493_v18 = vpack.c.bf16 %v80_v16, %v72_v15  ;;  %v77_v20 = vld [vmem:[#allocation5 + $0xc0] sm:$0xff]  ;;  %v79_v23 = vld [vmem:[#allocation5 + $0xd0] sm:$0xff]  ;;  %v58_v24 = vld [vmem:[#allocation5 + $0x28] sm:$0xff]  ;;  %v93_v57 = vsub.s32 1, %v88_v51  ;;  %v101_v58 = vsub.s32 3, %v88_v51  ;;  %v427_v60 = vunpack.c.0.s8 %v426_v54 }
  0x3c   :  { %492 = vmatpush1.bf16.msra.mxu1 %v491_v13  ;;  %v487_v22 = vpack.c.bf16 %v77_v20, %v69_v19  ;;  %486 = vmatprep.subr.bf16.mxu0 %v485_v17  ;;  %v495_v25 = vpack.c.bf16 %v79_v23, %v71_v21  ;;  %v52_v26 = vld [vmem:[#allocation2] sm:$0x3]  ;;  %v66_v27 = vld [vmem:[#allocation5 + $0x68] sm:$0xff]  ;;  %v57_v32 = vld [vmem:[#allocation5 + $0x20] sm:$0xff]  ;;  %v105_v5 = vsub.s32 4, %v88_v51  ;;  %v113_v9 = vsub.s32 6, %v88_v51  ;;  %p594_p13 = por %p593_p12, %p592_p11 }
  0x3d   :  { %494 = vmatprep.subr.bf16.mxu1 %v493_v18  ;;  %v60_v28 = vld [vmem:[#allocation5 + $0x38] sm:$0xff]  ;;  %v497_v30 = vpack.c.bf16 %v66_v27, %v58_v24  ;;  %v65_v33 = vld [vmem:[#allocation5 + $0x60] sm:$0xff]  ;;  %v59_v34 = vld [vmem:[#allocation5 + $0x30] sm:$0xff]  ;;  %v430_v4 = vsub.s32 %v427_v60, %v88_v51  ;;  %v109_v10 = vsub.s32 5, %v88_v51  ;;  %v117_v12 = vsub.s32 7, %v88_v51 }
  0x3e   :  { %v68_v29 = vld [vmem:[#allocation5 + $0x78] sm:$0xff]  ;;  %v499_v35 = vpack.c.bf16 %v65_v33, %v57_v32  ;;  %v67_v36 = vld [vmem:[#allocation5 + $0x70] sm:$0xff]  ;;  %v74_v37 = vld [vmem:[#allocation5 + $0xa8] sm:$0xff]  ;;  %p595_p0 = pnand %p594_p13, %p588_p10 }
  0x3f   :  { %v505_v31 = vpack.c.bf16 %v68_v29, %v60_v28  ;;  %488 = vmatpush1.bf16.msra.mxu0 %v487_v22  ;;  %v82_v38 = vld [vmem:[#allocation5 + $0xe8] sm:$0xff]  ;;  %v507_v39 = vpack.c.bf16 %v67_v36, %v59_v34  ;;  %v76_v41 = vld [vmem:[#allocation5 + $0xb8] sm:$0xff]  ;;  %v73_v43 = vld [vmem:[#allocation5 + $0xa0] sm:$0xff] }
  0x40   :  { %496 = vmatpush1.bf16.msra.mxu1 %v495_v25  ;;  %498 = vmatprep.subr.bf16.mxu0 %v497_v30  ;;  %v501_v40 = vpack.c.bf16 %v82_v38, %v74_v37  ;;  %v84_v42 = vld [vmem:[#allocation5 + $0xf8] sm:$0xff]  ;;  %v81_v45 = vld [vmem:[#allocation5 + $0xe0] sm:$0xff]  ;;  %v75_v46 = vld [vmem:[#allocation5 + $0xb0] sm:$0xff] }
  0x41   :  { %506 = vmatprep.subr.bf16.mxu1 %v505_v31  ;;  %v509_v44 = vpack.c.bf16 %v84_v42, %v76_v41  ;;  %v83_v47 = vld [vmem:[#allocation5 + $0xf0] sm:$0xff]  ;;  %v503_v48 = vpack.c.bf16 %v81_v45, %v73_v43  ;;  %v85_v55 = vld [vmem:[#allocation7] sm:$0xff] }
  0x42   :  { %477 = vmatmul.mubr.msk.f32.vlgmr.msra.gmra.mrb[0].mxu0 %vm127_vm0, %v52_v26  ;;  %v511_v49 = vpack.c.bf16 %v83_v47, %v75_v46  ;;  %v90_v59 = vrot.slane %v85_v55, %v89_v52  ;;  %v98_v61 = vrot.slane %v85_v55, %v97_v56  ;;  %v94_v62 = vrot.slane %v85_v55, %v93_v57 }
  0x43   :  { %478 = vmatmul.mubr.msk.f32.vlgmr.msra.gmra.mrb[0].mxu1 %vm127_vm0, %v52_v26  ;;  %500 = vmatpush1.bf16.msra.mxu0 %v499_v35  ;;  %v102_v63 = vrot.slane %v85_v55, %v101_v58  ;;  %v106_v15 = vrot.slane %v85_v55, %v105_v5  ;;  %v114_v17 = vrot.slane %v85_v55, %v113_v9 }
  0x44   :  { %508 = vmatpush1.bf16.msra.mxu1 %v507_v39  ;;  %502 = vmatprep.subr.bf16.mxu0 %v501_v40  ;;  %v110_v18 = vrot.slane %v85_v55, %v109_v10  ;;  %v118_v20 = vrot.slane %v85_v55, %v117_v12 }
  0x45   :  { %510 = vmatprep.subr.bf16.mxu1 %v509_v44  ;;  %337 = vmatprep.mubr.f32.mxu0 %v620_v0 }
  0x46   :  { %408 = vmatprep.mubr.f32.mxu1 %v620_v0 }
  0x47   :  { %504 = vmatpush1.bf16.msra.mxu0 %v503_v48 }
  0x48   :  { %512 = vmatpush1.bf16.msra.mxu1 %v511_v49 }
  0x4a   :  { %479 = vmatmul.mubr.msk.f32.vlgmr.msra.gmra.mrb[2].mxu0 %vm127_vm0, %v52_v26 }
  0x4b   :  { %480 = vmatmul.mubr.msk.f32.vlgmr.msra.gmra.mrb[2].mxu1 %vm127_vm0, %v52_v26 }
 0x115   :  { %v197_v0 = vpop.f32.mrb[0].mxu0 }
 0x116   :  { %v198_v1 = vadd.f32 %v197_v0, %v90_v59  ;;  %v268_v2 = vpop.f32.mrb[0].mxu1  ;;  %v199_v3 = vpop.f32.mrb[1].mxu0 }
 0x117   :  { %v269_v6 = vadd.f32 %v268_v2, %v98_v61  ;;  %v200_v7 = vadd.f32 %v199_v3, %v94_v62  ;;  %v270_v8 = vpop.f32.mrb[1].mxu1 }
 0x118   :  { %v271_v11 = vadd.f32 %v270_v8, %v102_v63 }
 0x119   :  { %v423_v13 = vcombine.low %v198_v1, %v200_v7 }
 0x11a   :  { %v424_v14 = vcombine.low %v269_v6, %v271_v11 }
 0x11b   :  { %v431_v16 = vrot.slane %v423_v13, %v430_v4 }
 0x11c   :  { %v438_v19 = vrot.slane %v424_v14, %v430_v4 }
 0x11d   :  { %v339_v21 = vpop.f32.mrb[2].mxu0 }
 0x11e   :  { %v340_v22 = vadd.f32 %v339_v21, %v106_v15  ;;  %v410_v23 = vpop.f32.mrb[2].mxu1  ;;  %v341_v24 = vpop.f32.mrb[3].mxu0  ;;  %v439_v25 = vcombine.low %v431_v16, %v438_v19 }
 0x11f   :  { %v411_v26 = vadd.f32 %v410_v23, %v114_v17  ;;  %v342_v27 = vadd.f32 %v341_v24, %v110_v18  ;;  %v412_v28 = vpop.f32.mrb[3].mxu1 }
 0x120   :  { %v413_v29 = vadd.f32 %v412_v28, %v118_v20  ;;  %459 = vst [vmem:[#allocation8] sm:$0xff] %v439_v25 }
 0x121   :  { %v440_v30 = vcombine.low %v340_v22, %v342_v27 }
 0x122   :  { %v441_v31 = vcombine.low %v411_v26, %v413_v29 }
 0x123   :  { %v448_v32 = vrot.slane %v440_v30, %v430_v4 }
 0x124   :  { %v455_v33 = vrot.slane %v441_v31, %v430_v4 }
 0x126   :  { %v456_v34 = vcombine.low %v448_v32, %v455_v33 }
 0x128   :  { %460 = vst [vmem:[#allocation8 + $0x8] sm:$0xff] %v456_v34 }
 0x129   :  { %598 = shalt.err (!%p595_p0)
}
 0x12a   :  { %s599_s25 = scalar_lea.hbm %s702_s3, 256 }
 0x12b   :  { %p600_p1 = scmp.ne.s32.totalorder %s702_s3, %s599_s25  ;;  %p603_p2 = scmp.lt.u32.totalorder %s599_s25, %s702_s3 }
 0x12d   :  { %p605_p3 = pnand %p603_p2, %p600_p1 }
 0x12f   :  { %608 = shalt.err (!%p605_p3)
}
 0x130   :  { %470 = dma.vmem_to_hbm [thread:$0]  %s468_s21, 256, %s702_s3, [#allocation4]  }
 0x131   :  { %613 = dma.done.wait [#allocation4], 256  }
 0x132   :  { %614 = vsyncadd [#allocation4], 4294967040 }
 0x133   :  { %474 = vsyncpa [#allocation3], 1 }
 0x134   :  { %475 = vsyncpa [#allocation6], 1 }
 0x135   :  { %476 = vsyncpa [#allocation4], 1 }

</bundles_post_ra>
